<compile_context>
chip_gen: v7x
topology: tpu7x:2x2x1
jax: 0.10.0
libtpu: 0.0.40
codegen_flags: <defaults>
</compile_context>

<pallas_src>
import functools

import jax
import jax.numpy as jnp
from jax.experimental import pallas as pl
from jax.experimental.pallas import tpu as pltpu


def _round_up(x, m):
    return (x + m - 1) // m * m


def _ln_relu(y, eps=1e-5):
    """CustomLayerNorm(dim=-1) with torch's UNBIASED (ddof=1) variance, then ReLU.

    Two-pass (mean, then centered sum-of-squares) for numerical robustness; the
    normalization uses rsqrt (EUP slot) instead of a VALU divide-by-sqrt.
    """
    n = y.shape[-1]
    mean = jnp.sum(y, axis=-1, keepdims=True) * (1.0 / n)
    d = y - mean
    var = jnp.sum(d * d, axis=-1, keepdims=True) * (1.0 / (n - 1))
    return jnp.maximum(d * jax.lax.rsqrt(var + eps), 0.0)


def hand_init_kernel(x_ref, w0_ref, b0_ref, w1_ref, b1_ref, wf_ref, bf_ref, o_ref,
                     *, compute_dtype):
    # x arrives in its HBM dtype (f32); cast to the MXU operand dtype in-kernel.
    x = x_ref[...].astype(compute_dtype)                     # (TB, d_in)

    # hidden layer 0: Linear -> CustomLayerNorm(-1) -> ReLU   (Dropout = identity at eval)
    y = jnp.dot(x, w0_ref[...], preferred_element_type=jnp.float32) + b0_ref[...]
    h = _ln_relu(y).astype(compute_dtype)

    # hidden layer 1: Linear -> CustomLayerNorm(-1) -> ReLU
    y = jnp.dot(h, w1_ref[...], preferred_element_type=jnp.float32) + b1_ref[...]
    h = _ln_relu(y).astype(compute_dtype)

    # final Linear -> num_joints * 3 (output padded to a lane-dense width)
    out = jnp.dot(h, wf_ref[...], preferred_element_type=jnp.float32) + bf_ref[...]
    o_ref[...] = out.astype(o_ref.dtype)


def prepare_hand_params(w0, b0, w1, b1, wf, bf, *,
                        compute_dtype=jnp.bfloat16, out_pad=128):
    """One-time parameter preprocessing (hoisted out of the per-call path).

    w*: (D_in, D_out) pre-transposed weights; b*: (1, D_out) biases.
    Pads the final layer to a lane-friendly width (128 for unmasked stores; 64 is
    also legal — full-array last dim — and halves output bytes at the cost of
    masked vst) and casts MXU operands to `compute_dtype` (biases stay f32).
    """
    d_out = wf.shape[1]
    d_out_p = _round_up(d_out, out_pad)
    wf_p = jnp.pad(wf, ((0, 0), (0, d_out_p - d_out)))
    bf_p = jnp.pad(bf, ((0, 0), (0, d_out_p - d_out)))
    return dict(
        w0=w0.astype(compute_dtype), b0=b0.astype(jnp.float32),
        w1=w1.astype(compute_dtype), b1=b1.astype(jnp.float32),
        wf=wf_p.astype(compute_dtype), bf=bf_p.astype(jnp.float32),
        d_out=d_out,
    )


def _jax_fallback(x, p, compute_dtype, out_dtype):
    """Plain-XLA path for small batches (fixed pallas_call overhead dominates there)."""
    def ln_relu(y):
        n = y.shape[-1]
        mu = jnp.mean(y, axis=-1, keepdims=True)
        d = y - mu
        var = jnp.sum(d * d, axis=-1, keepdims=True) / (n - 1)
        return jnp.maximum(d * jax.lax.rsqrt(var + 1e-5), 0.0)

    h = x.astype(compute_dtype)
    h = ln_relu(jnp.dot(h, p["w0"], preferred_element_type=jnp.float32) + p["b0"])
    h = ln_relu(jnp.dot(h.astype(compute_dtype), p["w1"],
                        preferred_element_type=jnp.float32) + p["b1"])
    out = jnp.dot(h.astype(compute_dtype), p["wf"],
                  preferred_element_type=jnp.float32) + p["bf"]
    return out[:, :p["d_out"]].astype(out_dtype)


def hand_initializer(x, params, *, out_dtype=None, block_b=2048,
                     min_pallas_batch=1024, force_pallas=False,
                     return_padded=False):
    """x: (B, d_in) f32; params from prepare_hand_params. Returns (B, num_joints*3)."""
    compute_dtype = params["w0"].dtype
    if out_dtype is None:
        out_dtype = compute_dtype          # bf16 output halves the dominant HBM stream

    B, d_in = x.shape
    d_out = params["d_out"]

    if B < min_pallas_batch and not force_pallas:
        return _jax_fallback(x, params, compute_dtype, out_dtype)

    h0 = params["w0"].shape[1]
    h1 = params["w1"].shape[1]
    d_out_p = params["wf"].shape[1]

    # Batch tile: multiple of 8 sublanes, capped at block_b.  If the whole batch
    # fits in one tile, split it so the grid has >= 2 "parallel" steps and both
    # TensorCores get work on v7x (free on single-TC v5e/v6e).
    B8 = _round_up(B, 8)
    tb = min(_round_up(block_b, 8), B8)
    if B8 // tb < 2 and B8 >= 16:
        tb = _round_up(B8 // 2, 8)
    B_p = _round_up(B8, tb)

    # x stays f32 in HBM (cast happens in-kernel); only pad the batch axis.
    x_p = x if B_p == B else jnp.pad(x, ((0, B_p - B), (0, 0)))

    grid = (B_p // tb,)
    # Constant index_map -> weights/biases DMA'd once, VMEM-resident across steps.
    const = lambda shape: pl.BlockSpec(shape, lambda i: (0, 0))

    out_p = pl.pallas_call(
        functools.partial(hand_init_kernel, compute_dtype=compute_dtype),
        out_shape=jax.ShapeDtypeStruct((B_p, d_out_p), out_dtype),
        grid=grid,
        in_specs=[
            pl.BlockSpec((tb, d_in), lambda i: (i, 0)),
            const((d_in, h0)), const((1, h0)),
            const((h0, h1)), const((1, h1)),
            const((h1, d_out_p)), const((1, d_out_p)),
        ],
        out_specs=pl.BlockSpec((tb, d_out_p), lambda i: (i, 0)),
        compiler_params=pltpu.CompilerParams(
            dimension_semantics=("parallel",)),   # megacore sharding on v7x
    )(x_p, params["w0"], params["b0"], params["w1"], params["b1"],
      params["wf"], params["bf"])

    if return_padded:
        return out_p                 # caller consumes padded layout, no extra pass
    return out_p[:B, :d_out]


def reference(x, w0, b0, w1, b1, wf, bf):
    """Pure-JAX f32 reference matching the torch module exactly (eval mode)."""
    def ln_relu(y):
        n = y.shape[-1]
        mu = jnp.mean(y, axis=-1, keepdims=True)
        d = y - mu
        var = jnp.sum(d * d, axis=-1, keepdims=True) / (n - 1)
        return jnp.maximum(d / jnp.sqrt(var + 1e-5), 0.0)

    h = ln_relu(x @ w0 + b0)
    h = ln_relu(h @ w1 + b1)
    return h @ wf + bf


if __name__ == "__main__":
    # Shapes consistent with the module:
    #   hand_feat_dim=16, obj_feat_dim=16 -> input dim 32
    #   init_hid_dims=(64, 64), num_joints=20 -> output dim 60
    B = 8
    hand_feat_dim, obj_feat_dim = 16, 16
    d_in = hand_feat_dim + obj_feat_dim
    h0, h1 = 64, 64
    num_joints = 20
    d_out = num_joints * 3

    key = jax.random.PRNGKey(0)
    kx, k0, k1, k2, k3, k4, k5 = jax.random.split(key, 7)

    x = jax.random.normal(kx, (B, d_in), dtype=jnp.float32)

    # Deterministic synthetic parameters (weights stored as (D_in, D_out)).
    w0 = jax.random.normal(k0, (d_in, h0), dtype=jnp.float32) * 0.1
    b0 = jax.random.normal(k1, (1, h0), dtype=jnp.float32) * 0.1
    w1 = jax.random.normal(k2, (h0, h1), dtype=jnp.float32) * 0.1
    b1 = jax.random.normal(k3, (1, h1), dtype=jnp.float32) * 0.1
    wf = jax.random.normal(k4, (h1, d_out), dtype=jnp.float32) * 0.1
    bf = jax.random.normal(k5, (1, d_out), dtype=jnp.float32) * 0.1

    ref = reference(x, w0, b0, w1, b1, wf, bf)

    # Parameters are prepared ONCE (pad/cast hoisted out of the per-call path).
    params_f32 = prepare_hand_params(w0, b0, w1, b1, wf, bf, compute_dtype=jnp.float32)
    params_bf16 = prepare_hand_params(w0, b0, w1, b1, wf, bf, compute_dtype=jnp.bfloat16)

    # 1) f32 MXU operands, Pallas path forced at small B: tight check vs module semantics.
    out = hand_initializer(x, params_f32, out_dtype=jnp.float32, force_pallas=True)
    out = jax.block_until_ready(out)
    assert out.shape == (B, d_out)
    assert jnp.allclose(out, ref, atol=1e-4, rtol=1e-4), "f32 pallas path mismatch"

    # 2) bf16 MXU operands + bf16 output (production config).
    out_bf = hand_initializer(x, params_bf16, force_pallas=True)
    out_bf = jax.block_until_ready(out_bf)
    assert jnp.allclose(out_bf.astype(jnp.float32), ref, atol=5e-2, rtol=5e-2), \
        "bf16 pallas path mismatch"

    # 3) larger, non-tile-multiple batch to exercise the pipelined multi-step grid.
    B2 = 1000
    x2 = jax.random.normal(jax.random.PRNGKey(1), (B2, d_in), dtype=jnp.float32)
    out2 = hand_initializer(x2, params_f32, out_dtype=jnp.float32,
                            block_b=256, force_pallas=True)
    out2 = jax.block_until_ready(out2)
    ref2 = reference(x2, w0, b0, w1, b1, wf, bf)
    assert out2.shape == (B2, d_out)
    assert jnp.allclose(out2, ref2, atol=1e-4, rtol=1e-4), "tiled pallas path mismatch"

    # 4) small-batch dispatch (plain-XLA fallback, the default below min_pallas_batch).
    out_fb = jax.block_until_ready(hand_initializer(x, params_f32, out_dtype=jnp.float32))
    assert jnp.allclose(out_fb, ref, atol=1e-4, rtol=1e-4), "fallback path mismatch"

    # TODO(synk): Dropout(0.1) is only active in training mode; inference forward is identity.
    print("KERNEL_OK")
</pallas_src>

<mosaic_0001>
module attributes {stable_mosaic.version = 11 : i64} {
  func.func @hand_init_kernel(%arg0: i32, %arg1: memref<8x32xf32, #tpu.memory_space<vmem>>, %arg2: memref<32x64xf32, #tpu.memory_space<vmem>>, %arg3: memref<1x64xf32, #tpu.memory_space<vmem>>, %arg4: memref<64x64xf32, #tpu.memory_space<vmem>>, %arg5: memref<1x64xf32, #tpu.memory_space<vmem>>, %arg6: memref<64x128xf32, #tpu.memory_space<vmem>>, %arg7: memref<1x128xf32, #tpu.memory_space<vmem>>, %arg8: memref<8x128xf32, #tpu.memory_space<vmem>>) attributes {dimension_semantics = [#tpu.dimension_semantics<parallel>], iteration_bounds = array<i64: 1>, scalar_prefetch = 0 : i64, scratch_operands = 0 : i64, tpu.core_type = #tpu.core_type<tc>, window_params = [{transform_indices = @transform_0, window_bounds = array<i64: 8, 32>}, {pipeline_mode = #tpu.pipeline_mode<synchronous>, transform_indices = @transform_1, window_bounds = array<i64: 32, 64>}, {pipeline_mode = #tpu.pipeline_mode<synchronous>, transform_indices = @transform_2, window_bounds = array<i64: 1, 64>}, {pipeline_mode = #tpu.pipeline_mode<synchronous>, transform_indices = @transform_3, window_bounds = array<i64: 64, 64>}, {pipeline_mode = #tpu.pipeline_mode<synchronous>, transform_indices = @transform_4, window_bounds = array<i64: 1, 64>}, {pipeline_mode = #tpu.pipeline_mode<synchronous>, transform_indices = @transform_5, window_bounds = array<i64: 64, 128>}, {pipeline_mode = #tpu.pipeline_mode<synchronous>, transform_indices = @transform_6, window_bounds = array<i64: 1, 128>}, {transform_indices = @transform_7, window_bounds = array<i64: 8, 128>}]} {
    %c0 = arith.constant 0 : index
    %c0_0 = arith.constant 0 : index
    %0 = vector.load %arg1[%c0, %c0_0] : memref<8x32xf32, #tpu.memory_space<vmem>>, vector<8x32xf32>
    %c0_1 = arith.constant 0 : index
    %c0_2 = arith.constant 0 : index
    %1 = vector.load %arg2[%c0_1, %c0_2] : memref<32x64xf32, #tpu.memory_space<vmem>>, vector<32x64xf32>
    %cst = arith.constant dense<0.000000e+00> : vector<8x64xf32>
    %2 = tpu.matmul %0, %1, %cst {dimension_numbers = #tpu.dot_dimension_numbers<[1], [0], [0], [1], [0, 0, 1, 1], [], []>} : vector<8x32xf32>, vector<32x64xf32>, vector<8x64xf32> -> vector<8x64xf32>
    %c0_3 = arith.constant 0 : index
    %c0_4 = arith.constant 0 : index
    %3 = vector.load %arg3[%c0_3, %c0_4] : memref<1x64xf32, #tpu.memory_space<vmem>>, vector<1x64xf32>
    %4 = vector.broadcast %3 : vector<1x64xf32> to vector<8x64xf32>
    %5 = arith.addf %2, %4 : vector<8x64xf32>
    %cst_5 = arith.constant dense<0.000000e+00> : vector<8xf32>
    %6 = vector.multi_reduction <add>, %5, %cst_5 [1] : vector<8x64xf32> to vector<8xf32>
    %7 = vector.shape_cast %6 : vector<8xf32> to vector<8x1xf32>
    %cst_6 = arith.constant 1.562500e-02 : f32
    %8 = vector.broadcast %cst_6 : f32 to vector<8x1xf32>
    %9 = arith.mulf %7, %8 : vector<8x1xf32>
    %10 = vector.broadcast %9 : vector<8x1xf32> to vector<8x64xf32>
    %11 = arith.subf %5, %10 : vector<8x64xf32>
    %12 = arith.mulf %11, %11 : vector<8x64xf32>
    %cst_7 = arith.constant dense<0.000000e+00> : vector<8xf32>
    %13 = vector.multi_reduction <add>, %12, %cst_7 [1] : vector<8x64xf32> to vector<8xf32>
    %14 = vector.shape_cast %13 : vector<8xf32> to vector<8x1xf32>
    %cst_8 = arith.constant 0.0158730168 : f32
    %15 = vector.broadcast %cst_8 : f32 to vector<8x1xf32>
    %16 = arith.mulf %14, %15 : vector<8x1xf32>
    %cst_9 = arith.constant 9.99999974E-6 : f32
    %17 = vector.broadcast %cst_9 : f32 to vector<8x1xf32>
    %18 = arith.addf %16, %17 : vector<8x1xf32>
    %19 = math.rsqrt %18 : vector<8x1xf32>
    %20 = vector.broadcast %19 : vector<8x1xf32> to vector<8x64xf32>
    %21 = arith.mulf %11, %20 : vector<8x64xf32>
    %cst_10 = arith.constant 0.000000e+00 : f32
    %22 = vector.broadcast %cst_10 : f32 to vector<8x64xf32>
    %23 = arith.maximumf %21, %22 : vector<8x64xf32>
    %c0_11 = arith.constant 0 : index
    %c0_12 = arith.constant 0 : index
    %24 = vector.load %arg4[%c0_11, %c0_12] : memref<64x64xf32, #tpu.memory_space<vmem>>, vector<64x64xf32>
    %cst_13 = arith.constant dense<0.000000e+00> : vector<8x64xf32>
    %25 = tpu.matmul %23, %24, %cst_13 {dimension_numbers = #tpu.dot_dimension_numbers<[1], [0], [0], [1], [0, 0, 1, 1], [], []>} : vector<8x64xf32>, vector<64x64xf32>, vector<8x64xf32> -> vector<8x64xf32>
    %c0_14 = arith.constant 0 : index
    %c0_15 = arith.constant 0 : index
    %26 = vector.load %arg5[%c0_14, %c0_15] : memref<1x64xf32, #tpu.memory_space<vmem>>, vector<1x64xf32>
    %27 = vector.broadcast %26 : vector<1x64xf32> to vector<8x64xf32>
    %28 = arith.addf %25, %27 : vector<8x64xf32>
    %cst_16 = arith.constant dense<0.000000e+00> : vector<8xf32>
    %29 = vector.multi_reduction <add>, %28, %cst_16 [1] : vector<8x64xf32> to vector<8xf32>
    %30 = vector.shape_cast %29 : vector<8xf32> to vector<8x1xf32>
    %cst_17 = arith.constant 1.562500e-02 : f32
    %31 = vector.broadcast %cst_17 : f32 to vector<8x1xf32>
    %32 = arith.mulf %30, %31 : vector<8x1xf32>
    %33 = vector.broadcast %32 : vector<8x1xf32> to vector<8x64xf32>
    %34 = arith.subf %28, %33 : vector<8x64xf32>
    %35 = arith.mulf %34, %34 : vector<8x64xf32>
    %cst_18 = arith.constant dense<0.000000e+00> : vector<8xf32>
    %36 = vector.multi_reduction <add>, %35, %cst_18 [1] : vector<8x64xf32> to vector<8xf32>
    %37 = vector.shape_cast %36 : vector<8xf32> to vector<8x1xf32>
    %cst_19 = arith.constant 0.0158730168 : f32
    %38 = vector.broadcast %cst_19 : f32 to vector<8x1xf32>
    %39 = arith.mulf %37, %38 : vector<8x1xf32>
    %cst_20 = arith.constant 9.99999974E-6 : f32
    %40 = vector.broadcast %cst_20 : f32 to vector<8x1xf32>
    %41 = arith.addf %39, %40 : vector<8x1xf32>
    %42 = math.rsqrt %41 : vector<8x1xf32>
    %43 = vector.broadcast %42 : vector<8x1xf32> to vector<8x64xf32>
    %44 = arith.mulf %34, %43 : vector<8x64xf32>
    %cst_21 = arith.constant 0.000000e+00 : f32
    %45 = vector.broadcast %cst_21 : f32 to vector<8x64xf32>
    %46 = arith.maximumf %44, %45 : vector<8x64xf32>
    %c0_22 = arith.constant 0 : index
    %c0_23 = arith.constant 0 : index
    %47 = vector.load %arg6[%c0_22, %c0_23] : memref<64x128xf32, #tpu.memory_space<vmem>>, vector<64x128xf32>
    %cst_24 = arith.constant dense<0.000000e+00> : vector<8x128xf32>
    %48 = tpu.matmul %46, %47, %cst_24 {dimension_numbers = #tpu.dot_dimension_numbers<[1], [0], [0], [1], [0, 0, 1, 1], [], []>} : vector<8x64xf32>, vector<64x128xf32>, vector<8x128xf32> -> vector<8x128xf32>
    %c0_25 = arith.constant 0 : index
    %c0_26 = arith.constant 0 : index
    %49 = vector.load %arg7[%c0_25, %c0_26] : memref<1x128xf32, #tpu.memory_space<vmem>>, vector<1x128xf32>
    %50 = vector.broadcast %49 : vector<1x128xf32> to vector<8x128xf32>
    %51 = arith.addf %48, %50 : vector<8x128xf32>
    %c0_27 = arith.constant 0 : index
    %c0_28 = arith.constant 0 : index
    %52 = vector.load %arg8[%c0_27, %c0_28] : memref<8x128xf32, #tpu.memory_space<vmem>>, vector<8x128xf32>
    tpu.vector_store %arg8[%c0_27, %c0_28], %51 {strides = array<i32>} : memref<8x128xf32, #tpu.memory_space<vmem>>, vector<8x128xf32>,
    return
  }
  func.func @transform_0(%arg0: i32) -> (i32, i32) {
    %c0_i32 = arith.constant 0 : i32
    %c0_i32_0 = arith.constant 0 : i32
    return %arg0, %c0_i32 : i32, i32
  }
  func.func @transform_1(%arg0: i32) -> (i32, i32) {
    %c0_i32 = arith.constant 0 : i32
    %c0_i32_0 = arith.constant 0 : i32
    %c0_i32_1 = arith.constant 0 : i32
    return %c0_i32, %c0_i32_0 : i32, i32
  }
  func.func @transform_2(%arg0: i32) -> (i32, i32) {
    %c0_i32 = arith.constant 0 : i32
    %c0_i32_0 = arith.constant 0 : i32
    %c0_i32_1 = arith.constant 0 : i32
    return %c0_i32, %c0_i32_0 : i32, i32
  }
  func.func @transform_3(%arg0: i32) -> (i32, i32) {
    %c0_i32 = arith.constant 0 : i32
    %c0_i32_0 = arith.constant 0 : i32
    %c0_i32_1 = arith.constant 0 : i32
    return %c0_i32, %c0_i32_0 : i32, i32
  }
  func.func @transform_4(%arg0: i32) -> (i32, i32) {
    %c0_i32 = arith.constant 0 : i32
    %c0_i32_0 = arith.constant 0 : i32
    %c0_i32_1 = arith.constant 0 : i32
    return %c0_i32, %c0_i32_0 : i32, i32
  }
  func.func @transform_5(%arg0: i32) -> (i32, i32) {
    %c0_i32 = arith.constant 0 : i32
    %c0_i32_0 = arith.constant 0 : i32
    %c0_i32_1 = arith.constant 0 : i32
    return %c0_i32, %c0_i32_0 : i32, i32
  }
  func.func @transform_6(%arg0: i32) -> (i32, i32) {
    %c0_i32 = arith.constant 0 : i32
    %c0_i32_0 = arith.constant 0 : i32
    %c0_i32_1 = arith.constant 0 : i32
    return %c0_i32, %c0_i32_0 : i32, i32
  }
  func.func @transform_7(%arg0: i32) -> (i32, i32) {
    %c0_i32 = arith.constant 0 : i32
    %c0_i32_0 = arith.constant 0 : i32
    return %arg0, %c0_i32 : i32, i32
  }
}

</mosaic_0001>

<bundles_post_ra>
// kernel: tpu_custom_call.1
= control target key start
LH: loop header
LB: loop body
LE: loop exit
PB: predicated region body
PF: predicated region fallthrough
CT: control target
= control target key end

     0   :  { %12 = vsyncpa [#allocation3], 0  ;;  %s776_s0 = inlined_call_operand.hbm [shape: f32[8,32], index: 0, kind: input, shape index: {}]   ;;  %s777_s1 = inlined_call_operand.hbm [shape: f32[32,64], index: 1, kind: input, shape index: {}]   ;;  %s778_s2 = inlined_call_operand.vmem [shape: f32[1,64], index: 2, kind: input, shape index: {}]   ;;  %s779_s3 = inlined_call_operand.hbm [shape: f32[64,64], index: 3, kind: input, shape index: {}]   ;;  %s780_s4 = inlined_call_operand.vmem [shape: f32[1,64], index: 4, kind: input, shape index: {}]   ;;  %s781_s5 = inlined_call_operand.hbm [shape: f32[64,128], index: 5, kind: input, shape index: {}]   ;;  %s782_s6 = inlined_call_operand.vmem [shape: f32[1,128], index: 6, kind: input, shape index: {}]   ;;  %s783_s7 = inlined_call_operand.hbm [shape: f32[8,128], index: 7, kind: output, shape index: {}]  }
   0x1   :  { %13 = vsyncpa [#allocation6], 0 }
   0x2   :  { %14 = vsyncpa [#allocation9], 0 }
   0x3   :  { %15 = vsyncpa [#allocation4], 0  ;;  %s629_s24 = smov [#allocation5]   ;;  %s511_s28 = scalar_lea.hbm %s777_s1, 512 }
   0x4   :  { %s31_s25 = sshll.u32 %s629_s24, 4  ;;  %p512_p0 = scmp.ne.s32.totalorder %s777_s1, %s511_s28  ;;  %s32_s25 = int_to_ptr.vmem [resolvable:$true] %s31_s25 }
   0x5   :  { %p515_p1 = scmp.lt.u32.totalorder %s511_s28, %s777_s1 }
   0x7   :  { %p517_p2 = pnand %p515_p1, %p512_p0 }
   0x9   :  { %520 = shalt.err (!%p517_p2)
}
   0xa   :  { %s521_s10 = scalar_lea.vmem %s32_s25, 512  ;;  %p526_p4 = scmp.lt.s32.totalorder %s32_s25, %s32_s25 }
   0xb   :  { %p522_p3 = scmp.ne.s32.totalorder %s32_s25, %s521_s10  ;;  %p527_p5 = scmp.lt.s32.totalorder %s521_s10, %s521_s10 }
   0xd   :  { %p528_p6 = por %p527_p5, %p526_p4 }
   0xf   :  { %p529_p7 = pnand %p528_p6, %p522_p3 }
  0x11   :  { %532 = shalt.err (!%p529_p7)
}
  0x12   :  { %s630_s11 = smov 128   ;;  %s631_s12 = smov 8  }
  0x13   :  { %37 = dma.hbm_to_vmem [thread:$0]  %s777_s1, 512, %s32_s25, [#allocation6], %s630_s11, %s630_s11, %s631_s12  }
  0x14   :  { %s632_s15 = smov [#allocation2]   ;;  %s633_s17 = smov [#allocation7]  }
  0x15   :  { %s22_s16 = sshll.u32 %s632_s15, 4  ;;  %s45_s18 = sshll.u32 %s633_s17, 4  ;;  %s23_s16 = int_to_ptr.vmem [resolvable:$true] %s22_s16  ;;  %s46_s18 = int_to_ptr.vmem [resolvable:$true] %s45_s18 }
  0x16   :  { %s533_s21 = scalar_lea.hbm %s776_s0, 128 }
  0x17   :  { %p534_p8 = scmp.ne.s32.totalorder %s776_s0, %s533_s21  ;;  %p537_p9 = scmp.lt.u32.totalorder %s533_s21, %s776_s0 }
  0x19   :  { %p539_p10 = pnand %p537_p9, %p534_p8 }
  0x1b   :  { %542 = shalt.err (!%p539_p10)
}
  0x1c   :  { %s543_s1 = scalar_lea.vmem %s23_s16, 128  ;;  %p548_p12 = scmp.lt.s32.totalorder %s23_s16, %s23_s16 }
  0x1d   :  { %p544_p11 = scmp.ne.s32.totalorder %s23_s16, %s543_s1  ;;  %p549_p13 = scmp.lt.s32.totalorder %s543_s1, %s543_s1 }
  0x1f   :  { %p550_p0 = por %p549_p13, %p548_p12 }
  0x21   :  { %p551_p1 = pnand %p550_p0, %p544_p11 }
  0x23   :  { %554 = shalt.err (!%p551_p1)
}
  0x24   :  { %25 = dma.hbm_to_vmem [thread:$0]  %s776_s0, 128, %s23_s16, [#allocation3]  }
  0x25   :  { %s555_s30 = scalar_lea.hbm %s779_s3, 1024 }
  0x26   :  { %p556_p2 = scmp.ne.s32.totalorder %s779_s3, %s555_s30  ;;  %p559_p3 = scmp.lt.u32.totalorder %s555_s30, %s779_s3 }
  0x28   :  { %p561_p4 = pnand %p559_p3, %p556_p2 }
  0x2a   :  { %564 = shalt.err (!%p561_p4)
}
  0x2b   :  { %s565_s14 = scalar_lea.vmem %s46_s18, 1024  ;;  %p570_p6 = scmp.lt.s32.totalorder %s46_s18, %s46_s18 }
  0x2c   :  { %p566_p5 = scmp.ne.s32.totalorder %s46_s18, %s565_s14  ;;  %p571_p7 = scmp.lt.s32.totalorder %s565_s14, %s565_s14 }
  0x2e   :  { %p572_p8 = por %p571_p7, %p570_p6 }
  0x30   :  { %p573_p9 = pnand %p572_p8, %p566_p5 }
  0x32   :  { %576 = shalt.err (!%p573_p9)
}
  0x33   :  { %51 = dma.hbm_to_vmem [thread:$0]  %s779_s3, 1024, %s46_s18, [#allocation6], %s630_s11, %s630_s11, %s631_s12  }
  0x34   :  { %s634_s16 = smov [#allocation8]   ;;  %s577_s21 = scalar_lea.hbm %s781_s5, 1024 }
  0x35   :  { %s59_s17 = sshll.u32 %s634_s16, 4  ;;  %p578_p10 = scmp.ne.s32.totalorder %s781_s5, %s577_s21  ;;  %s60_s17 = int_to_ptr.vmem [resolvable:$true] %s59_s17 }
  0x36   :  { %p581_p11 = scmp.lt.u32.totalorder %s577_s21, %s781_s5 }
  0x38   :  { %p583_p12 = pnand %p581_p11, %p578_p10 }
  0x3a   :  { %586 = shalt.err (!%p583_p12)
}
  0x3b   :  { %s587_s1 = scalar_lea.vmem %s60_s17, 1024  ;;  %p592_p0 = scmp.lt.s32.totalorder %s60_s17, %s60_s17 }
  0x3c   :  { %p588_p13 = scmp.ne.s32.totalorder %s60_s17, %s587_s1  ;;  %p593_p1 = scmp.lt.s32.totalorder %s587_s1, %s587_s1 }
  0x3e   :  { %p594_p2 = por %p593_p1, %p592_p0 }
  0x40   :  { %p595_p3 = pnand %p594_p2, %p588_p13 }
  0x42   :  { %598 = shalt.err (!%p595_p3)
}
  0x43   :  { %65 = dma.hbm_to_vmem [thread:$0]  %s781_s5, 1024, %s60_s17, [#allocation9], %s630_s11, %s630_s11, %s631_s12  }
  0x44   :  { %621 = dma.done.wait [#allocation3], 128  }
  0x45   :  { %622 = vsyncadd [#allocation3], 4294967168 }
  0x46   :  { %623 = dma.done.wait [#allocation6], 1536  }
  0x47   :  { %624 = vsyncadd [#allocation6], 4294965760 }
  0x48   :  { %625 = dma.done.wait [#allocation9], 1024  }
  0x49   :  { %626 = vsyncadd [#allocation9], 4294966272  ;;  %v635_v0 = vmov 0.0|0.0   ;;  %vm636_vm0 = vmmov 0   ;;  %v637_v1 = vmov 0.0   ;;  %v81_v2 = vld [vmem:[#allocation5] sm:$0xff] }
  0x4a   :  { %467 = vmatprep.subr.bf16.mxu0 %v635_v0  ;;  %426 = vmatprep.mubr.msk.f32.mxu0 %vm636_vm0, %v637_v1  ;;  %v82_v3 = vld [vmem:[#allocation5 + $0x8] sm:$0xff]  ;;  %v83_v4 = vld [vmem:[#allocation5 + $0x10] sm:$0xff]  ;;  %v84_v6 = vld [vmem:[#allocation5 + $0x18] sm:$0xff]  ;;  %vm92_vm1 = vcmask 261120   ;;  %vm166_vm2 = vcmask 523264   ;;  %s638_s27 = smov [#allocation10]  }
  0x4b   :  { %473 = vmatprep.subr.bf16.mxu1 %v635_v0  ;;  %445 = vmatprep.mubr.msk.f32.mxu1 %vm636_vm0, %v637_v1  ;;  %v468_v5 = vpack.c.bf16 %v82_v3, %v81_v2  ;;  %v471_v7 = vpack.c.bf16 %v84_v6, %v83_v4  ;;  %v80_v8 = vld [vmem:[#allocation2] sm:$0xff]  ;;  %v181_v19 = vld [vmem:[#allocation7] sm:$0xff]  ;;  %v182_v20 = vld [vmem:[#allocation7 + $0x8] sm:$0xff]  ;;  %s378_s28 = sshll.u32 %s638_s27, 4  ;;  %s379_s28 = int_to_ptr.vmem [resolvable:$true] %s378_s28 }
  0x4c   :  { %v389_v9 = vld [vmem:[%s778_s2] ss:$0 sm:$0xff]  ;;  %v474_v21 = vpack.c.bf16 %v182_v20, %v181_v19  ;;  %v183_v22 = vld [vmem:[#allocation7 + $0x10] sm:$0xff]  ;;  %v185_v25 = vld [vmem:[#allocation7 + $0x20] sm:$0xff]  ;;  %s599_s29 = scalar_lea.vmem %s379_s28, 128  ;;  %p604_p5 = scmp.lt.s32.totalorder %s379_s28, %s379_s28 }
  0x4d   :  { %469 = vmatpush3.bf16.msra.mxu0 %v468_v5  ;;  %v184_v23 = vld [vmem:[#allocation7 + $0x18] sm:$0xff]  ;;  %v186_v26 = vld [vmem:[#allocation7 + $0x28] sm:$0xff]  ;;  %v187_v28 = vld [vmem:[#allocation7 + $0x30] sm:$0xff]  ;;  %p600_p4 = scmp.ne.s32.totalorder %s379_s28, %s599_s29  ;;  %p605_p6 = scmp.lt.s32.totalorder %s599_s29, %s599_s29 }
  0x4e   :  { %470 = vmatprep.subr.bf16.mxu0 %v635_v0  ;;  %475 = vmatpush3.bf16.msra.mxu1 %v474_v21  ;;  %v477_v24 = vpack.c.bf16 %v184_v23, %v183_v22  ;;  %v480_v27 = vpack.c.bf16 %v186_v26, %v185_v25  ;;  %v188_v29 = vld [vmem:[#allocation7 + $0x38] sm:$0xff]  ;;  %v283_v47 = vld [vmem:[#allocation8] sm:$0xff]  ;;  %v284_v48 = vld [vmem:[#allocation8 + $0x8] sm:$0xff] }
  0x4f   :  { %476 = vmatprep.subr.bf16.mxu1 %v635_v0  ;;  %v483_v30 = vpack.c.bf16 %v188_v29, %v187_v28  ;;  %v391_v37 = vld [vmem:[%s780_s4] ss:$0 sm:$0xff]  ;;  %v486_v49 = vpack.c.bf16 %v284_v48, %v283_v47  ;;  %v285_v50 = vld [vmem:[#allocation8 + $0x10] sm:$0xff]  ;;  %v287_v53 = vld [vmem:[#allocation8 + $0x20] sm:$0xff]  ;;  %p606_p7 = por %p605_p6, %p604_p5 }
  0x50   :  { %v286_v51 = vld [vmem:[#allocation8 + $0x18] sm:$0xff]  ;;  %v288_v54 = vld [vmem:[#allocation8 + $0x28] sm:$0xff]  ;;  %v289_v56 = vld [vmem:[#allocation8 + $0x30] sm:$0xff] }
  0x51   :  { %472 = vmatpush3.bf16.msra.mxu0 %v471_v7  ;;  %v489_v52 = vpack.c.bf16 %v286_v51, %v285_v50  ;;  %v492_v55 = vpack.c.bf16 %v288_v54, %v287_v53  ;;  %v290_v57 = vld [vmem:[#allocation8 + $0x38] sm:$0xff]  ;;  %p607_p8 = pnand %p606_p7, %p600_p4 }
  0x52   :  { %485 = vmatprep.subr.bf16.mxu0 %v635_v0  ;;  %478 = vmatpush3.bf16.msra.mxu1 %v477_v24  ;;  %v495_v58 = vpack.c.bf16 %v290_v57, %v289_v56  ;;  %v393_v2 = vld [vmem:[%s782_s6] ss:$0 sm:$0xff] }
  0x53   :  { %479 = vmatprep.subr.bf16.mxu1 %v635_v0 }
  0x54   :  { %427 = vmatmul.mubr.msk.f32.vlgmr.msra.gmra.mrb[0].mxu0 %vm92_vm1, %v80_v8 }
  0x55   :  { %464 = vmatprep.mubr.msk.f32.mxu0 %vm636_vm0, %v637_v1  ;;  %487 = vmatpush3.bf16.msra.mxu0 %v486_v49 }
  0x56   :  { %481 = vmatpush3.bf16.msra.mxu1 %v480_v27  ;;  %488 = vmatprep.subr.bf16.mxu0 %v635_v0 }
  0x57   :  { %482 = vmatprep.subr.bf16.mxu1 %v635_v0 }
  0x59   :  { %490 = vmatpush3.bf16.msra.mxu0 %v489_v52 }
  0x5a   :  { %484 = vmatpush3.bf16.msra.mxu1 %v483_v30  ;;  %491 = vmatprep.subr.bf16.mxu0 %v635_v0 }
  0x5d   :  { %493 = vmatpush3.bf16.msra.mxu0 %v492_v55 }
  0x5e   :  { %494 = vmatprep.subr.bf16.mxu0 %v635_v0 }
  0x61   :  { %496 = vmatpush3.bf16.msra.mxu0 %v495_v58 }
 0x127   :  { %v162_v10 = vpop.f32.mrb[0].mxu0 }
 0x128   :  { %v163_v11 = vadd.f32 %v389_v9, %v162_v10  ;;  %v428_v12 = vpop.f32.mrb[1].mxu0 }
 0x12a   :  { %v167_v13 = vsel %vm166_vm2, %v163_v11, 0.0 }
 0x12b   :  { %168 = vadd.xlane.f32.xlu0 %v167_v13 }
 0x1b8   :  { %v169_v14 = vpop.xlane.xlu0 %168 }
 0x1b9   :  { %v170_v15 = vmul.f32 0.015625, %v169_v14 }
 0x1bb   :  { %v171_v16 = vsub.f32 %v163_v11, %v170_v15 }
 0x1bd   :  { %v172_v17 = vmul.f32 %v171_v16, %v171_v16 }
 0x1bf   :  { %v173_v18 = vsel %vm166_vm2, %v172_v17, 0.0 }
 0x1c0   :  { %174 = vadd.xlane.f32.xlu0 %v173_v18 }
 0x24d   :  { %v175_v31 = vpop.xlane.xlu0 %174 }
 0x24e   :  { %v176_v32 = vmul.f32 0.015873017, %v175_v31 }
 0x250   :  { %v177_v33 = vadd.f32 1e-05, %v176_v32 }
 0x252   :  { %507 = vrsqrt.f32 %v177_v33 }
 0x25c   :  { %v508_v34 = vpop.eup %507 }
 0x25d   :  { %v179_v35 = vmul.f32 %v508_v34, %v171_v16 }
 0x25f   :  { %v180_v36 = vmax.f32 %v179_v35, 0.0 }
 0x261   :  { %446 = vmatmul.mubr.msk.f32.vlgmr.msra.gmra.mrb[0].mxu1 %vm166_vm2, %v180_v36 }
 0x334   :  { %v265_v38 = vpop.f32.mrb[0].mxu1 }
 0x335   :  { %v266_v39 = vadd.f32 %v391_v37, %v265_v38  ;;  %v447_v40 = vpop.f32.mrb[1].mxu1 }
 0x337   :  { %v269_v41 = vsel %vm166_vm2, %v266_v39, 0.0 }
 0x338   :  { %270 = vadd.xlane.f32.xlu1 %v269_v41 }
 0x3c5   :  { %v271_v42 = vpop.xlane.xlu1 %270 }
 0x3c6   :  { %v272_v43 = vmul.f32 0.015625, %v271_v42 }
 0x3c8   :  { %v273_v44 = vsub.f32 %v266_v39, %v272_v43 }
 0x3ca   :  { %v274_v45 = vmul.f32 %v273_v44, %v273_v44 }
 0x3cc   :  { %v275_v46 = vsel %vm166_vm2, %v274_v45, 0.0 }
 0x3cd   :  { %276 = vadd.xlane.f32.xlu1 %v275_v46 }
 0x45a   :  { %v277_v59 = vpop.xlane.xlu1 %276 }
 0x45b   :  { %v278_v60 = vmul.f32 0.015873017, %v277_v59 }
 0x45d   :  { %v279_v61 = vadd.f32 1e-05, %v278_v60 }
 0x45f   :  { %509 = vrsqrt.f32 %v279_v61 }
 0x469   :  { %v510_v62 = vpop.eup %509 }
 0x46a   :  { %v281_v63 = vmul.f32 %v510_v62, %v273_v44 }
 0x46c   :  { %v282_v1 = vmax.f32 %v281_v63, 0.0 }
 0x46e   :  { %465 = vmatmul.mubr.msk.f32.vlgmr.msra.gmra.mrb[2].mxu0 %vm166_vm2, %v282_v1 }
 0x541   :  { %v367_v0 = vpop.f32.mrb[2].mxu0 }
 0x542   :  { %v368_v3 = vadd.f32 %v393_v2, %v367_v0  ;;  %v466_v4 = vpop.f32.mrb[3].mxu0 }
 0x544   :  { %371 = vst [vmem:[#allocation10] sm:$0xff] %v368_v3 }
 0x545   :  { %610 = shalt.err (!%p607_p8)
}
 0x546   :  { %s611_s9 = scalar_lea.hbm %s783_s7, 128 }
 0x547   :  { %p612_p9 = scmp.ne.s32.totalorder %s783_s7, %s611_s9  ;;  %p615_p10 = scmp.lt.u32.totalorder %s611_s9, %s783_s7 }
 0x549   :  { %p617_p11 = pnand %p615_p10, %p612_p9 }
 0x54b   :  { %620 = shalt.err (!%p617_p11)
}
 0x54c   :  { %381 = dma.vmem_to_hbm [thread:$0]  %s379_s28, 128, %s783_s7, [#allocation4]  }
 0x54d   :  { %627 = dma.done.wait [#allocation4], 128  }
 0x54e   :  { %628 = vsyncadd [#allocation4], 4294967168 }
 0x54f   :  { %385 = vsyncpa [#allocation3], 1 }
 0x550   :  { %386 = vsyncpa [#allocation6], 1 }
 0x551   :  { %387 = vsyncpa [#allocation9], 1 }
 0x552   :  { %388 = vsyncpa [#allocation4], 1 }

</bundles_post_ra>
